<compile_context>
chip_gen: v7x
topology: tpu7x:2x2x1
jax: 0.10.0
libtpu: 0.0.40
codegen_flags: <defaults>
</compile_context>

<pallas_src>
import functools
import math

import jax
import jax.numpy as jnp
from jax.experimental import pallas as pl
from jax.experimental.pallas import tpu as pltpu


def _proj_kernel(x_ref, w_ref, out_ref):
    # x_ref: (tile, vec_size), w_ref: (vec_size, emb_dim), out_ref: (tile, emb_dim)
    out_ref[...] = jnp.dot(
        x_ref[...], w_ref[...], preferred_element_type=jnp.float32
    ).astype(out_ref.dtype)


def _proj_pe_kernel(scale, x_ref, w_ref, pe_ref, out_ref):
    # Linear projection + positional encoding (scale then add), fused.
    h = jnp.dot(x_ref[...], w_ref[...], preferred_element_type=jnp.float32)
    out_ref[...] = (h * scale + pe_ref[...]).astype(out_ref.dtype)


def _pick_tile(n, target=256):
    """Row-tile along the position axis: full extent if small, else a multiple of 8 dividing n."""
    if n <= target:
        return n
    t = target - (target % 8)
    while t >= 8:
        if n % t == 0:
            return t
        t -= 8
    return n  # fall back to a single block


def vec_embedding_forward(x, w_t, pe=None, *, step=None, block_rows=None):
    """VecEmbedding.forward.

    x   : (d0, d1, vec_size) float32 (d0 is the position axis used by PositionalEncoding)
    w_t : (vec_size, emb_dim)  == torch Linear.weight.T  (so x @ w_t == proj(x))
    pe  : (max_len, 1, emb_dim) sinusoidal buffer, or None (position_encoding=False)
    Returns (d0, d1, emb_dim).
    """
    S, B, V = x.shape
    E = w_t.shape[1]
    tS = block_rows if block_rows is not None else _pick_tile(S)
    assert S % tS == 0, (S, tS)

    # Put the broadcast axis (dim 1) outermost so every kernel block is a clean 2-D slab.
    xt = jnp.transpose(x, (1, 0, 2)).astype(jnp.float32)        # (B, S, V)
    grid = (B, S // tS)

    x_spec = pl.BlockSpec((None, tS, V), lambda b, i: (b, i, 0))
    w_spec = pl.BlockSpec((V, E), lambda b, i: (0, 0))          # resident across the grid
    out_spec = pl.BlockSpec((None, tS, E), lambda b, i: (b, i, 0))

    if pe is not None:
        if step is None:
            pe_rows = pe[:S, 0, :]                              # (S, E), indexed by position
        else:
            pe_rows = jnp.broadcast_to(pe[step], (S, E))        # pe[step]: (1, E) broadcast
        kernel = functools.partial(_proj_pe_kernel, math.sqrt(float(E)))
        in_specs = [x_spec, w_spec, pl.BlockSpec((tS, E), lambda b, i: (i, 0))]
        operands = (xt, w_t.astype(jnp.float32), pe_rows.astype(jnp.float32))
    else:
        kernel = _proj_kernel
        in_specs = [x_spec, w_spec]
        operands = (xt, w_t.astype(jnp.float32))

    out_t = pl.pallas_call(
        kernel,
        out_shape=jax.ShapeDtypeStruct((B, S, E), jnp.float32),
        grid=grid,
        in_specs=in_specs,
        out_specs=out_spec,
        compiler_params=pltpu.CompilerParams(
            dimension_semantics=("parallel", "parallel"),
            vmem_limit_bytes=32 * 1024 * 1024,
        ),
    )(*operands)
    # TODO(synk): nn.Dropout(p=dropout) in PositionalEncoding is eval-mode identity here
    # (add pltpu.prng_seed/prng_random_bits masking in-kernel if training parity is needed).
    return jnp.transpose(out_t, (1, 0, 2))                      # back to (d0, d1, emb_dim)


def make_positional_encoding(dim, max_len=512):
    """Replica of the PyTorch PositionalEncoding buffer: (max_len, 1, dim)."""
    position = jnp.arange(max_len, dtype=jnp.float32)[:, None]
    div_term = jnp.exp(
        jnp.arange(0, dim, 2, dtype=jnp.float32) * (-math.log(10000.0) / dim)
    )
    angles = position * div_term                                # (max_len, dim//2)
    buf = jnp.zeros((max_len, dim), jnp.float32)
    buf = buf.at[:, 0::2].set(jnp.sin(angles))
    buf = buf.at[:, 1::2].set(jnp.cos(angles))
    return buf[:, None, :]


def vec_embedding_reference(x, w_t, pe=None, step=None):
    """Pure-JAX replica of the PyTorch forward (eval mode) for verification."""
    out = jnp.einsum("sbv,ve->sbe", x, w_t, precision=jax.lax.Precision.HIGHEST)
    if pe is not None:
        out = out * math.sqrt(float(w_t.shape[1]))
        out = out + (pe[: x.shape[0]] if step is None else pe[step])
    return out


if __name__ == "__main__":
    # Small shapes consistent with the module: seq=16, batch=4, vec_size=64, emb_dim=128
    # (emb_dim chosen as a multiple of 128 for lane-dense output stores).
    S, B, V, E = 16, 4, 64, 128

    key = jax.random.PRNGKey(0)
    kx, kw = jax.random.split(key)

    x = jax.random.normal(kx, (S, B, V), jnp.float32)
    bound = 1.0 / math.sqrt(V)  # torch nn.Linear default init; stored as weight.T: (V, E)
    w_t = jax.random.uniform(kw, (V, E), jnp.float32, -bound, bound)
    pe = make_positional_encoding(E, max_len=512)

    # 1) position_encoding=True, step=None
    out_pe = jax.block_until_ready(vec_embedding_forward(x, w_t, pe, block_rows=8))
    ref_pe = vec_embedding_reference(x, w_t, pe)
    assert out_pe.shape == (S, B, E), out_pe.shape
    assert jnp.allclose(out_pe, ref_pe, rtol=2e-3, atol=2e-3), float(
        jnp.max(jnp.abs(out_pe - ref_pe))
    )

    # 2) position_encoding=False (plain projection)
    out_np = jax.block_until_ready(vec_embedding_forward(x, w_t, None, block_rows=8))
    ref_np = vec_embedding_reference(x, w_t, None)
    assert jnp.allclose(out_np, ref_np, rtol=2e-3, atol=2e-3), float(
        jnp.max(jnp.abs(out_np - ref_np))
    )

    # 3) stepwise decode: seq_len=1, use pe[step]
    step = 5
    out_st = jax.block_until_ready(vec_embedding_forward(x[:1], w_t, pe, step=step))
    ref_st = vec_embedding_reference(x[:1], w_t, pe, step=step)
    assert jnp.allclose(out_st, ref_st, rtol=2e-3, atol=2e-3), float(
        jnp.max(jnp.abs(out_st - ref_st))
    )

    print("KERNEL_OK")
</pallas_src>

<mosaic_0001>
module attributes {stable_mosaic.version = 11 : i64} {
  func.func @_proj_pe_kernel(%arg0: i32, %arg1: i32, %arg2: memref<1x8x64xf32, #tpu.memory_space<vmem>>, %arg3: memref<64x128xf32, #tpu.memory_space<vmem>>, %arg4: memref<8x128xf32, #tpu.memory_space<vmem>>, %arg5: memref<1x8x128xf32, #tpu.memory_space<vmem>>) attributes {dimension_semantics = [#tpu.dimension_semantics<parallel>, #tpu.dimension_semantics<parallel>], iteration_bounds = array<i64: 4, 2>, scalar_prefetch = 0 : i64, scratch_operands = 0 : i64, tpu.core_type = #tpu.core_type<tc>, window_params = [{transform_indices = @transform_0, window_bounds = array<i64: 1, 8, 64>}, {pipeline_mode = #tpu.pipeline_mode<synchronous>, transform_indices = @transform_1, window_bounds = array<i64: 64, 128>}, {transform_indices = @transform_2, window_bounds = array<i64: 8, 128>}, {transform_indices = @transform_3, window_bounds = array<i64: 1, 8, 128>}]} {
    %c0 = arith.constant 0 : index
    %c0_0 = arith.constant 0 : index
    %c0_1 = arith.constant 0 : index
    %0 = vector.load %arg2[%c0, %c0_0, %c0_1] : memref<1x8x64xf32, #tpu.memory_space<vmem>>, vector<1x8x64xf32>
    %1 = vector.shape_cast %0 : vector<1x8x64xf32> to vector<8x64xf32>
    %c0_2 = arith.constant 0 : index
    %c0_3 = arith.constant 0 : index
    %2 = vector.load %arg3[%c0_2, %c0_3] : memref<64x128xf32, #tpu.memory_space<vmem>>, vector<64x128xf32>
    %cst = arith.constant dense<0.000000e+00> : vector<8x128xf32>
    %3 = tpu.matmul %1, %2, %cst {dimension_numbers = #tpu.dot_dimension_numbers<[1], [0], [0], [1], [0, 0, 1, 1], [], []>} : vector<8x64xf32>, vector<64x128xf32>, vector<8x128xf32> -> vector<8x128xf32>
    %cst_4 = arith.constant 11.3137083 : f32
    %4 = vector.broadcast %cst_4 : f32 to vector<8x128xf32>
    %5 = arith.mulf %3, %4 : vector<8x128xf32>
    %c0_5 = arith.constant 0 : index
    %c0_6 = arith.constant 0 : index
    %6 = vector.load %arg4[%c0_5, %c0_6] : memref<8x128xf32, #tpu.memory_space<vmem>>, vector<8x128xf32>
    %7 = arith.addf %5, %6 : vector<8x128xf32>
    %c0_7 = arith.constant 0 : index
    %c0_8 = arith.constant 0 : index
    %c0_9 = arith.constant 0 : index
    %8 = vector.load %arg5[%c0_7, %c0_8, %c0_9] : memref<1x8x128xf32, #tpu.memory_space<vmem>>, vector<1x8x128xf32>
    %9 = vector.shape_cast %8 : vector<1x8x128xf32> to vector<8x128xf32>
    %10 = vector.shape_cast %7 : vector<8x128xf32> to vector<1x8x128xf32>
    tpu.vector_store %arg5[%c0_7, %c0_8, %c0_9], %10 {strides = array<i32>} : memref<1x8x128xf32, #tpu.memory_space<vmem>>, vector<1x8x128xf32>,
    return
  }
  func.func @transform_0(%arg0: i32, %arg1: i32) -> (i32, i32, i32) {
    %c0_i32 = arith.constant 0 : i32
    %c0_i32_0 = arith.constant 0 : i32
    return %arg0, %arg1, %c0_i32 : i32, i32, i32
  }
  func.func @transform_1(%arg0: i32, %arg1: i32) -> (i32, i32) {
    %c0_i32 = arith.constant 0 : i32
    %c0_i32_0 = arith.constant 0 : i32
    %c0_i32_1 = arith.constant 0 : i32
    return %c0_i32, %c0_i32_0 : i32, i32
  }
  func.func @transform_2(%arg0: i32, %arg1: i32) -> (i32, i32) {
    %c0_i32 = arith.constant 0 : i32
    %c0_i32_0 = arith.constant 0 : i32
    return %arg1, %c0_i32 : i32, i32
  }
  func.func @transform_3(%arg0: i32, %arg1: i32) -> (i32, i32, i32) {
    %c0_i32 = arith.constant 0 : i32
    %c0_i32_0 = arith.constant 0 : i32
    return %arg0, %arg1, %c0_i32 : i32, i32, i32
  }
}

</mosaic_0001>

<bundles_post_ra>
// kernel: tpu_custom_call.1
= control target key start
LH: loop header
LB: loop body
LE: loop exit
PB: predicated region body
PF: predicated region fallthrough
CT: control target
= control target key end

     0   :  { %s1245_s0 = inlined_call_operand.hbm [shape: f32[4,16,64], index: 0, kind: input, shape index: {}]   ;;  %s1246_s1 = inlined_call_operand.hbm [shape: f32[64,128], index: 1, kind: input, shape index: {}]   ;;  %s1247_s2 = inlined_call_operand.hbm [shape: f32[16,128], index: 2, kind: input, shape index: {}]   ;;  %s1248_s3 = inlined_call_operand.hbm [shape: f32[4,16,128], index: 3, kind: output, shape index: {}]  }
   0x1   :  { %1263 = sst [smem:[#allocation18_spill]] %s1245_s0 }
   0x2   :  { %1264 = sst [smem:[#allocation19_spill]] %s1248_s3 }
   0x3   :  { %8 = vsyncpa [#allocation3], 0 }
   0x4   :  { %10 = vsyncpa [#allocation3 + $0x1], 0 }
   0x5   :  { %11 = vsyncpa [#allocation6], 0 }
   0x6   :  { %12 = vsyncpa [#allocation4], 0 }
   0x7   :  { %14 = vsyncpa [#allocation4 + $0x1], 0  ;;  %s904_s12 = smov 0   ;;  %s906_s13 = smov 0  }
   0x8   :  { %s908_s14 = smov 0   ;;  %s910_s15 = smov 0  }
   0x9   :  { %s912_s16 = smov 0   ;;  %s914_s17 = smov 0  }
   0xa   :  { %s916_s18 = smov 0   ;;  %s918_s19 = smov 0  }
   0xb   :  { %s920_s20 = smov 0   ;;  %s922_s21 = smov 0  }
   0xc   :  { %s924_s22 = smov 0  }
   0xd LB: > { %1265 = sst [smem:[#allocation13_spill]] %s857_s18  ;;  %s960_s23 = sadd.s32 4294967295, %s873_s22   ;;  %s873_s22 = sphi %s924_s22, %s20_s22   ;;  %s869_s21 = sphi %s922_s21, %s1297_s21   ;;  %s865_s20 = sphi %s920_s20, %s1305_s20   ;;  %s861_s19 = sphi %s918_s19, %s1295_s19   ;;  %s857_s18 = sphi %s916_s18, %s1304_s18   ;;  %s853_s17 = sphi %s914_s17, %s1303_s17   ;;  %s849_s16 = sphi %s912_s16, %s1302_s16   ;;  %s845_s15 = sphi %s910_s15, %s1301_s15   ;;  %s841_s14 = sphi %s908_s14, %s1300_s14   ;;  %s837_s13 = sphi %s906_s13, %s1299_s13   ;;  %s833_s12 = sphi %s904_s12, %s1298_s12  }
   0xe   : > { %1266 = sst [smem:[#allocation14_spill]] %s869_s21  ;;  %s472_s24 = sadd.s32 4294967294, %s873_s22  }
   0xf   : > { %s29_s25 = sadd.s32 1, %s865_s20  ;;  %s32_s26 = sadd.s32 1, %s869_s21 }
  0x10   : > { %p30_p0 = scmp.ge.s32.totalorder %s29_s25, 2  ;;  %s41_s27 = sadd.s32 1, %s853_s17 }
  0x11   : > { %p48_p1 = scmp.ne.s32.totalorder %s853_s17, %s849_s16  ;;  %p1255_p2 = scmp.eq.s32.totalorder %s873_s22, 0 }
  0x12   : > { %s1307_s25 = smov (%p30_p0, %s29_s25), 0  ;;  %s1309_s26 = smov (!%p30_p0, %s32_s26), %s869_s21 }
  0x13   : > { %1267 = sst [smem:[#allocation15_spill]] %s1307_s25  ;;  %s974_s28 = ssub.s32 %s865_s20, %s1307_s25 }
  0x14   : > { %p978_p3 = por %p1255_p2, %p48_p1  ;;  %p34_p4 = scmp.ge.s32.totalorder %s1309_s26, 4 }
  0x15   : > { %p1256_p5 = scmp.ne.s32.totalorder %s849_s16, %s845_s15  ;;  %p127_p7 = scmp.eq.s32.totalorder %s960_s23, 7 }
  0x16   : > { %s1311_s26 = smov (%p34_p4, %s1309_s26), 0  ;;  %p133_p9 = scmp.eq.s32.totalorder %s472_s24, 7 }
  0x17   : > { %1269 = sst [smem:[#allocation16_spill]] %s1311_s26  ;;  %p988_p8 = por %p127_p7, %p48_p1 }
  0x18   : > { %s36_s4 = ssub.s32 %s869_s21, %s1311_s26  ;;  %p998_p10 = por %p133_p9, %p1256_p5 }
  0x19   : > { %s1270_s30 = scalar_select %p988_p8, 1, 0 }
  0x1a   : > { %s38_s5 = sor.u32 %s974_s28, %s36_s4  ;;  %p1254_p12 = scmp.lt.s32.totalorder %s873_s22, 8 }
  0x1b   : > { %1271 = sst [smem:[#allocation17_spill]] %s1270_s30  ;;  %p39_p11 = scmp.eq.s32.totalorder %s38_s5, 0 }
  0x1c   : > { %s1272_s6 = scalar_select %p998_p10, 1, 0 }
  0x1d   : > { %s166_s7 = sand.u32 1, %s873_s22   ;;  %s168_s9 = sand.u32 1, %s853_s17  }
  0x1e   : > { %s1005_s8 = scalar_select %p39_p11, %s853_s17, %s41_s27  }
  0x1f   : > { %s476_s10 = sshll.u32 %s168_s9, 3  ;;  %s477_s11 = sshll.u32 %s869_s21, 1 }
  0x20   : > { %s175_s25 = sadd.s32 %s865_s20, %s477_s11  ;;  %s170_s24 = scalar_lea.vmem [#allocation2], %s476_s10 }
  0x21   : > { %s478_s3 = sshll.u32 %s175_s25, 7  ;;  %s179_s26 = sshll.u32 %s170_s24, 4  ;;  %s1015_s26 = int_to_ptr.vmem [resolvable:$true] %s179_s26 }
  0x22   : > { %s1273_s0 = sld [smem:[#allocation18_spill]]  ;;  %p1021_p13 = pnand %p1254_p12, %p978_p3 }
  0x23   : > { %s1025_s25 = scalar_lea.sflag [#allocation3], %s166_s7 }
  0x24   : > { %p657_p1 = pneg %p1021_p13 }
  0x28   : > { %s1013_s4 = scalar_lea.hbm %s1273_s0, %s478_s3  ;;  %s660_s29 = scalar_lea.hbm %s1273_s0, 1024 }
  0x29   : > { %s655_s5 = scalar_lea.hbm %s1013_s4, 128  ;;  %p661_p3 = scmp.lt.u32.totalorder %s1013_s4, %s1273_s0 }
  0x2a   : > { %p656_p0 = scmp.ne.s32.totalorder %s1013_s4, %s655_s5  ;;  %p662_p9 = scmp.lt.u32.totalorder %s660_s29, %s655_s5 }
  0x2b   : > { %p664_p12 = scmp.lt.u32.totalorder %s655_s5, %s1013_s4 }
  0x2c   : > { %p658_p4 = pnand %p657_p1, %p656_p0  ;;  %p663_p11 = por %p662_p9, %p661_p3 }
  0x2e   : > { %p659_p7 = pneg %p658_p4  ;;  %p665_p2 = por %p664_p12, %p663_p11 }
  0x30   : > { %p666_p6 = pnand %p665_p2, %p659_p7 }
  0x32   : > { %669 = shalt.err (!%p666_p6)
}
  0x33   : > { %s670_s7 = scalar_lea.vmem %s1015_s26, 128  ;;  %s875_s10 = smov [#allocation2]  }
  0x34   : > { %p671_p0 = scmp.ne.s32.totalorder %s1015_s26, %s670_s7  ;;  %s675_s11 = sshll.u32 %s875_s10, 4  ;;  %s676_s11 = int_to_ptr.vmem [resolvable:$false] %s675_s11 }
  0x35   : > { %s677_s24 = scalar_lea.vmem %s676_s11, 256  ;;  %p678_p10 = scmp.lt.s32.totalorder %s1015_s26, %s676_s11 }
  0x36   : > { %p673_p4 = pnand %p671_p0, %p657_p1  ;;  %p679_p3 = scmp.lt.s32.totalorder %s677_s24, %s670_s7 }
  0x38   : > { %p674_p5 = pneg %p673_p4  ;;  %p680_p9 = por %p679_p3, %p678_p10 }
  0x3a   : > { %p681_p12 = pnand %p680_p9, %p674_p5 }
  0x3c   : > { %684 = shalt.err (!%p681_p12)
}
  0x3d   : > { %549 = dma.hbm_to_vmem [thread:$0]  (!%p1021_p13), %s1013_s4, 128, %s1015_s26, %s1025_s25  }
  0x3e   : > { %p1257_p2 = scmp.eq.s32.totalorder %s960_s23, 0  ;;  %p473_p6 = scmp.ge.s32.totalorder %s873_s22, 1 }
  0x3f   : > { %p140_p1 = scmp.lt.s32.totalorder %s873_s22, 9  ;;  %p1275_p10 = scmp.ne.s32.totalorder %s849_s16, %s845_s15 }
  0x40   : > { %s876_s27 = smov [#allocation5]   ;;  %s88_s4 = sadd.s32 1, %s841_s14 }
  0x41   : > { %p1061_p5 = por %p1257_p2, %p1275_p10  ;;  %s152_s3 = sshll.u32 %s876_s27, 4  ;;  %s153_s3 = int_to_ptr.vmem [resolvable:$true] %s152_s3 }
  0x42   : > { %p1065_p7 = pnand %p473_p6, %p140_p1  ;;  %s685_s9 = scalar_lea.hbm %s1246_s1, 1024 }
  0x43   : > { %s1276_s5 = scalar_select %p1061_p5, 1, 0 }
  0x44   : > { %s1277_s18 = scalar_select %p1065_p7, 1, 0 }
  0x45   : > { %p542_p11 = pneg %p1065_p7  ;;  %p686_p0 = scmp.ne.s32.totalorder %s1246_s1, %s685_s9 }
  0x46   : > { %p692_p12 = scmp.lt.u32.totalorder %s685_s9, %s1246_s1 }
  0x47   : > { %p1073_p13 = pnand %p542_p11, %p1257_p2 }
  0x49   : > { %p687_p4 = pneg %p1073_p13 }
  0x4b   : > { %p688_p3 = pnand %p687_p4, %p686_p0 }
  0x4d   : > { %p689_p9 = pneg %p688_p3 }
  0x4f   : > { %p694_p6 = pnand %p692_p12, %p689_p9 }
  0x51   : > { %697 = shalt.err (!%p694_p6)
}
  0x52   : > { %s698_s27 = scalar_lea.vmem %s153_s3, 1024  ;;  %p706_p2 = scmp.lt.s32.totalorder %s153_s3, %s153_s3 }
  0x53   : > { %p699_p1 = scmp.ne.s32.totalorder %s153_s3, %s698_s27  ;;  %p707_p8 = scmp.lt.s32.totalorder %s698_s27, %s698_s27 }
  0x55   : > { %p701_p10 = pnand %p699_p1, %p687_p4  ;;  %p708_p5 = por %p707_p8, %p706_p2 }
  0x57   : > { %p702_p11 = pneg %p701_p10 }
  0x59   : > { %p709_p7 = pnand %p708_p5, %p702_p11 }
  0x5b   : > { %712 = shalt.err (!%p709_p7)
}
  0x5c   : > { %s877_s29 = smov 128   ;;  %s878_s30 = smov 8  }
  0x5d   : > { %545 = dma.hbm_to_vmem [thread:$0]  (!%p1073_p13), %s1246_s1, 1024, %s153_s3, [#allocation6], %s877_s29, %s877_s29, %s878_s30  }
  0x5e   : > { %p1279_p8 = scmp.eq.s32.totalorder %s974_s28, 0  ;;  %p95_p2 = scmp.ne.s32.totalorder %s841_s14, %s837_s13 }
  0x5f   : > { %p101_p5 = scmp.ne.s32.totalorder %s837_s13, %s833_s12  ;;  %s188_s11 = sand.u32 1, %s841_s14  }
  0x60   : > { %s1097_s10 = scalar_select %p1279_p8, %s841_s14, %s88_s4  }
  0x61   : > { %s480_s24 = sshll.u32 %s865_s20, 7  ;;  %p1280_p7 = scmp.eq.s32.totalorder %s873_s22, 0 }
  0x62   : > { %p1281_p4 = scmp.eq.s32.totalorder %s960_s23, 0  ;;  %s479_s0 = sshll.u32 %s188_s11, 3 }
  0x63   : > { %p97_p0 = por %p95_p2, %p1280_p7  ;;  %s1116_s9 = scalar_lea.hbm %s1247_s2, %s480_s24 }
  0x64   : > { %p1109_p3 = por %p101_p5, %p1281_p4  ;;  %p1283_p13 = scmp.lt.s32.totalorder %s873_s22, 8 }
  0x65   : > { %s190_s28 = scalar_lea.vmem [#allocation7], %s479_s0  ;;  %s713_s4 = scalar_lea.hbm %s1116_s9, 128 }
  0x66   : > { %s1282_s27 = scalar_select %p1109_p3, 1, 0 }
  0x67   : > { %p1120_p9 = pnand %p1283_p13, %p97_p0  ;;  %s197_s3 = sshll.u32 %s190_s28, 4  ;;  %s198_s3 = int_to_ptr.vmem [resolvable:$true] %s197_s3 }
  0x68   : > { %p714_p12 = scmp.ne.s32.totalorder %s1116_s9, %s713_s4  ;;  %s718_s30 = scalar_lea.hbm %s1247_s2, 256 }
  0x69   : > { %p715_p6 = pneg %p1120_p9  ;;  %p719_p11 = scmp.lt.u32.totalorder %s1116_s9, %s1247_s2 }
  0x6a   : > { %p720_p8 = scmp.lt.u32.totalorder %s718_s30, %s713_s4  ;;  %p722_p5 = scmp.lt.u32.totalorder %s713_s4, %s1116_s9 }
  0x6b   : > { %p716_p1 = pnand %p715_p6, %p714_p12 }
  0x6c   : > { %p721_p2 = por %p720_p8, %p719_p11 }
  0x6d   : > { %p717_p10 = pneg %p716_p1 }
  0x6e   : > { %p723_p7 = por %p722_p5, %p721_p2 }
  0x70   : > { %p724_p0 = pnand %p723_p7, %p717_p10 }
  0x72   : > { %727 = shalt.err (!%p724_p0)
}
  0x73   : > { %s728_s0 = scalar_lea.vmem %s198_s3, 128  ;;  %s879_s24 = smov [#allocation7]  }
  0x74   : > { %p729_p4 = scmp.ne.s32.totalorder %s198_s3, %s728_s0  ;;  %s733_s26 = sshll.u32 %s879_s24, 4  ;;  %s734_s26 = int_to_ptr.vmem [resolvable:$false] %s733_s26 }
  0x75   : > { %s735_s28 = scalar_lea.vmem %s734_s26, 256  ;;  %p736_p1 = scmp.lt.s32.totalorder %s198_s3, %s734_s26 }
  0x76   : > { %p731_p13 = pnand %p729_p4, %p715_p6  ;;  %p737_p3 = scmp.lt.s32.totalorder %s735_s28, %s728_s0 }
  0x78   : > { %p732_p12 = pneg %p731_p13  ;;  %p738_p8 = por %p737_p3, %p736_p1 }
  0x7a   : > { %p739_p11 = pnand %p738_p8, %p732_p12 }
  0x7c   : > { %742 = shalt.err (!%p739_p11)
}
  0x7d   : > { %552 = dma.hbm_to_vmem [thread:$0]  (!%p1120_p9), %s1116_s9, 128, %s198_s3, %s1025_s25  }
  0x7e   : > { %p1285_p10 = scmp.ne.s32.totalorder %s1277_s18, 0 }
  0x7f   : > { %s208_s4 = sand.u32 (!%p1285_p10), 1, %s960_s23   ;;  %s210_s21 = sand.u32 (!%p1285_p10), 1, %s849_s16  }
  0x80   : > { %206 = sbr.rel (%p1285_p10) target bundleno = 391 (0x187), region = 32  ;;  %s1152_s29 = sshll.u32 (!%p1285_p10), %s210_s21, 3 }
  0x81   : > { %s209_s30 = scalar_lea.sflag (!%p1285_p10), [#allocation3], %s208_s4  ;;  %s212_s7 = scalar_lea.vmem (!%p1285_p10), [#allocation2], %s1152_s29 }
  0x82   : > { %p1286_p3 = scmp.ne.s32.totalorder (!%p1285_p10), %s1276_s5, 0 }
  0x87   : > { %816 = dma.done.wait (%p1286_p3), %s209_s30, 128  }
  0x88   : > { %818 = vsyncadd (%p1286_p3), %s209_s30, 4294967168  ;;  %p1287_p9 = scmp.eq.s32.totalorder %s960_s23, 0 }
  0x8a   : > { %820 = dma.done.wait (%p1287_p9), [#allocation6], 1024   ;;  %p1288_p6 = pmov %p1287_p9 }
  0x8b   : > { %s223_s25 = sand.u32 1, %s837_s13   ;;  %p1289_p2 = scmp.ne.s32.totalorder %s1282_s27, 0 }
  0x8c   : > { %822 = vsyncadd (%p1288_p6), [#allocation6], 4294966272  ;;  %s1164_s18 = sshll.u32 %s223_s25, 3 }
  0x8d   : > { %s225_s9 = scalar_lea.vmem [#allocation7], %s1164_s18 }
  0x8e   : > { %824 = dma.done.wait (%p1289_p2), %s209_s30, 128  }
  0x8f   : > { %826 = vsyncadd (%p1289_p2), %s209_s30, 4294967168  ;;  %v880_v0 = vmov 0.0|0.0   ;;  %vm881_vm0 = vmmov 0   ;;  %v882_v1 = vmov 0.0   ;;  %v254_v2 = vld [vmem:[#allocation5] sm:$0xff]  ;;  %v255_v3 = vld [vmem:[#allocation5 + $0x8] sm:$0xff] }
  0x90   : > { %520 = vmatprep.subr.bf16.mxu0 %v880_v0  ;;  %517 = vmatprep.mubr.msk.f32.mxu0 %vm881_vm0, %v882_v1  ;;  %v256_v4 = vld [vmem:[#allocation5 + $0x10] sm:$0xff]  ;;  %v521_v5 = vpack.c.bf16 %v255_v3, %v254_v2  ;;  %v257_v6 = vld [vmem:[#allocation5 + $0x18] sm:$0xff]  ;;  %s1290_s23 = sld [smem:[#allocation13_spill]]  ;;  %v258_v8 = vld [vmem:[#allocation5 + $0x20] sm:$0xff]  ;;  %vm262_vm1 = vcmask 523264   ;;  %s488_s5 = sshll.u32 %s861_s19, 1 }
  0x91   : > { %v524_v7 = vpack.c.bf16 %v257_v6, %v256_v4  ;;  %v259_v9 = vld [vmem:[#allocation5 + $0x28] sm:$0xff]  ;;  %v260_v11 = vld [vmem:[#allocation5 + $0x30] sm:$0xff]  ;;  %v261_v12 = vld [vmem:[#allocation5 + $0x38] sm:$0xff]  ;;  %s1291_s27 = sld [smem:[#allocation17_spill]]  ;;  %s252_s11 = scalar_lea.vmem [#allocation8], %s1152_s29 }
  0x92   : > { %522 = vmatpush3.bf16.msra.mxu0 %v521_v5  ;;  %v527_v10 = vpack.c.bf16 %v259_v9, %v258_v8  ;;  %v530_v13 = vpack.c.bf16 %v261_v12, %v260_v11  ;;  %v253_v14 = vld [vmem:[%s212_s7] sm:$0xff]  ;;  %v337_v16 = vld [vmem:[%s225_s9] sm:$0xff]  ;;  %s356_s0 = sshll.u32 %s252_s11, 4  ;;  %s1292_s28 = sld [smem:[#allocation19_spill]]  ;;  %s1183_s0 = int_to_ptr.vmem [resolvable:$true] %s356_s0 }
  0x93   : > { %523 = vmatprep.subr.bf16.mxu0 %v880_v0  ;;  %s341_s19 = scalar_lea.sflag [#allocation4], %s210_s21  ;;  %s743_s30 = scalar_lea.vmem %s1183_s0, 128 }
  0x94   : > { %p744_p5 = scmp.ne.s32.totalorder %s1183_s0, %s743_s30  ;;  %s883_s29 = smov [#allocation8]  }
  0x95   : > { %s747_s7 = sshll.u32 %s883_s29, 4  ;;  %s748_s7 = int_to_ptr.vmem [resolvable:$false] %s747_s7 }
  0x96   : > { %525 = vmatpush3.bf16.msra.mxu0 %v524_v7  ;;  %s352_s12 = sadd.s32 %s1290_s23, %s488_s5  ;;  %s749_s25 = scalar_lea.vmem %s748_s7, 256 }
  0x97   : > { %526 = vmatprep.subr.bf16.mxu0 %v880_v0  ;;  %s489_s3 = sshll.u32 %s352_s12, 7  ;;  %p1293_p7 = scmp.ne.s32.totalorder %s1291_s27, 0 }
  0x98   : > { %s1181_s4 = scalar_lea.hbm %s1292_s28, %s489_s3  ;;  %p750_p13 = scmp.lt.s32.totalorder %s1183_s0, %s748_s7 }
  0x99   : > { %p745_p0 = pnand %p744_p5, %p1293_p7  ;;  %p751_p12 = scmp.lt.s32.totalorder %s749_s25, %s743_s30 }
  0x9a   : > { %528 = vmatpush3.bf16.msra.mxu0 %v527_v10 }
  0x9b   : > { %529 = vmatprep.subr.bf16.mxu0 %v880_v0  ;;  %p746_p4 = pneg %p745_p0  ;;  %p752_p1 = por %p751_p12, %p750_p13 }
  0x9d   : > { %p753_p8 = pnand %p752_p1, %p746_p4 }
  0x9e   : > { %531 = vmatpush3.bf16.msra.mxu0 %v530_v13 }
  0xa1   : > { %518 = vmatmul.mubr.msk.f32.vlgmr.msra.gmra.mrb[0].mxu0 %vm262_vm1, %v253_v14 }
 0x174   : > { %v332_v15 = vpop.f32.mrb[0].mxu0 }
 0x175   : > { %v336_v17 = vmul.f32 11.313708, %v332_v15  ;;  %v519_v18 = vpop.f32.mrb[1].mxu0 }
 0x177   : > { %v338_v19 = vadd.f32 %v337_v16, %v336_v17 }
 0x179   : > { %339 = vst [vmem:[%s252_s11] sm:$0xff] %v338_v19 }
 0x17a   : > { %756 = shalt.err (!%p753_p8)
}
 0x17b   : > { %s757_s21 = scalar_lea.hbm %s1181_s4, 128  ;;  %s761_s23 = scalar_lea.hbm %s1292_s28, 1024 }
 0x17c   : > { %p758_p11 = scmp.ne.s32.totalorder %s1181_s4, %s757_s21  ;;  %p762_p9 = scmp.lt.u32.totalorder %s1181_s4, %s1292_s28 }
 0x17d   : > { %p763_p6 = scmp.lt.u32.totalorder %s761_s23, %s757_s21  ;;  %p765_p5 = scmp.lt.u32.totalorder %s757_s21, %s1181_s4 }
 0x17e   : > { %p759_p10 = pnand %p758_p11, %p1293_p7 }
 0x17f   : > { %p764_p2 = por %p763_p6, %p762_p9 }
 0x180   : > { %p760_p3 = pneg %p759_p10 }
 0x181   : > { %p766_p0 = por %p765_p5, %p764_p2 }
 0x183   : > { %p767_p4 = pnand %p766_p0, %p760_p3 }
 0x185   : > { %770 = shalt.err (!%p767_p4)
}
 0x186   : > { %540 = dma.vmem_to_hbm [thread:$0]  (%p1293_p7), %s1183_s0, 128, %s1181_s4, %s341_s19  }
 0x187 PF: > { %p560_p13 = scmp.ge.s32.totalorder %s873_s22, 2  ;;  %s368_s3 = sand.u32 1, %s845_s15  }
 0x188   : > { %p1294_p12 = scmp.ne.s32.totalorder %s1272_s6, 0  ;;  %s369_s11 = scalar_lea.sflag [#allocation4], %s368_s3 }
 0x18a   : > { %p554_p1 = pnand %p560_p13, %p1294_p12 }
 0x18c   : > { %828 = dma.done.wait (!%p554_p1), %s369_s11, 128  }
 0x18d   : > { %830 = vsyncadd (!%p554_p1), %s369_s11, 4294967168  ;;  %s20_s22 = sadd.s32 1, %s873_s22   ;;  %s1295_s19 = sld [smem:[#allocation14_spill]] }
 0x18e   : > { %p17_p8 = scmp.ge.s32.totalorder %s20_s22, 10   ;;  %s1296_s27 = sld [smem:[#allocation15_spill]] }
 0x18f   : > { %s1297_s21 = sld [smem:[#allocation16_spill]]  ;;  %s1298_s12 = smov %s837_s13 }
 0x190   : > { %s1299_s13 = smov %s841_s14  ;;  %s1300_s14 = smov %s1097_s10 }
 0x191   : > { %s1301_s15 = smov %s849_s16  ;;  %s1302_s16 = smov %s853_s17 }
 0x192   : > { %s1303_s17 = smov %s1005_s8  ;;  %s1304_s18 = smov %s865_s20 }
 0x193   :  { %19 = sbr.rel (!%p17_p8) target bundleno = 13 (0xd), region = 92 }
 0x194   : > { %s1305_s20 = smov %s1296_s27 }
 0x19a   :  { %374 = vsyncpa [#allocation3], 1 }
 0x19b   :  { %376 = vsyncpa [#allocation3 + $0x1], 1 }
 0x19c   :  { %377 = vsyncpa [#allocation6], 1 }
 0x19d   :  { %378 = vsyncpa [#allocation4], 1 }
 0x19e   :  { %380 = vsyncpa [#allocation4 + $0x1], 1 }

</bundles_post_ra>
